<compile_context>
chip_gen: v7x
topology: tpu7x:2x2x1
jax: 0.10.0
libtpu: 0.0.40
codegen_flags: <defaults>
</compile_context>

<pallas_src>
import functools

import jax
import jax.numpy as jnp
from jax.experimental import pallas as pl
from jax.experimental.pallas import tpu as pltpu


# ---------------------------------------------------------------------------
# kernels
# ---------------------------------------------------------------------------

def _resident_kernel(x_ref, w1_ref, b1_ref, w2_ref, b2_ref, o_ref):
    """Both (Hp, Hp) weights resident in VMEM; one row tile of x per grid step."""
    x = x_ref[...]
    h = jnp.dot(x.astype(w1_ref.dtype), w1_ref[...],
                preferred_element_type=jnp.float32) + b1_ref[...]
    h = jnp.maximum(h, 0.0).astype(w2_ref.dtype)
    y = jnp.dot(h, w2_ref[...], preferred_element_type=jnp.float32) + b2_ref[...]
    y = y + x.astype(jnp.float32)               # residual in original precision
    o_ref[...] = jnp.maximum(y, 0.0).astype(o_ref.dtype)


def _tiled_kernel(x_ref, xcol_ref, w_ref, b_ref, o_ref, h_ref):
    """Weights streamed over output columns; grid = (row tiles, phase, col tiles).

    phase 0: h[:, col j] = relu(x @ W1^T[:, col j] + b1[col j])   -> VMEM scratch
    phase 1: o[:, col j] = relu(h @ W2^T[:, col j] + b2[col j] + x[:, col j])
    The output block (i, j) is revisited in phase 1, which fully overwrites
    whatever phase 0 left in it, so the final HBM contents are correct.
    """
    p = pl.program_id(1)
    j = pl.program_id(2)
    tn = o_ref.shape[-1]

    @pl.when(p == 0)
    def _():
        h = jnp.dot(x_ref[...].astype(w_ref.dtype), w_ref[0],
                    preferred_element_type=jnp.float32) + b_ref[0]
        h_ref[j] = jnp.maximum(h, 0.0).astype(h_ref.dtype)

    @pl.when(p == 1)
    def _():
        acc = jnp.zeros(o_ref.shape, jnp.float32) + b_ref[0]
        for k in range(h_ref.shape[0]):          # static unroll over K blocks
            acc = acc + jnp.dot(h_ref[k], w_ref[0, k * tn:(k + 1) * tn, :],
                                preferred_element_type=jnp.float32)
        acc = acc + xcol_ref[...].astype(jnp.float32)
        o_ref[...] = jnp.maximum(acc, 0.0).astype(o_ref.dtype)


# ---------------------------------------------------------------------------
# planning helpers
# ---------------------------------------------------------------------------

def _round_up(n, m):
    return ((n + m - 1) // m) * m


def _vmem_capacity_bytes():
    try:
        return int(pltpu.get_tpu_info().vmem_capacity_bytes)
    except Exception:
        return 64 * 1024 * 1024                  # conservative (v7x-sized) fallback


def _resident_need(tm, Hp, c_it, x_it, o_it):
    # W1^T + W2^T single-buffered, biases, double-buffered x/o tiles, plus the
    # f32 h / accumulator and compute-dtype casts of the intermediates.
    return (2 * Hp * Hp * c_it + 2 * Hp * 4
            + 2 * tm * Hp * (x_it + o_it)
            + tm * Hp * (8 + 2 * c_it))


def _tiled_need(tm, tn, Hp, c_it, x_it, o_it):
    return (2 * Hp * tn * c_it + 2 * tn * 4              # streamed W / bias blocks
            + 2 * tm * Hp * x_it + 2 * tm * tn * (x_it + o_it)   # x, xcol, o tiles
            + tm * Hp * c_it                              # resident h scratch
            + tm * Hp * c_it + 2 * tm * tn * 4)           # casts + f32 accumulators


def _plan(H, *, compute_dtype, tm, act_itemsize, out_itemsize, force_tiled):
    c_it = jnp.dtype(compute_dtype).itemsize
    x_it = int(act_itemsize)
    o_it = int(out_itemsize)

    Hp = max(128, _round_up(H, 128))
    pack = max(8, 32 // max(1, x_it))            # sublanes per fully packed vreg
    budget = int(_vmem_capacity_bytes() * 0.9)

    tm_plan = _round_up(max(tm, pack), pack)
    tiled = bool(force_tiled)

    if not tiled:
        t = tm_plan
        while t > pack and _resident_need(t, Hp, c_it, x_it, o_it) > budget:
            t = max(pack, _round_up(t // 2, pack))
        if _resident_need(t, Hp, c_it, x_it, o_it) <= budget:
            tm_plan = t
        else:
            tiled = True                          # weights can't be resident

    tn = 0
    if tiled:
        tn = min(512, Hp)
        while Hp % tn != 0:                       # lane-dense col blocks dividing Hp
            tn -= 128
        t = tm_plan
        while t > pack and _tiled_need(t, tn, Hp, c_it, x_it, o_it) > budget:
            t = max(pack, _round_up(t // 2, pack))
        tm_plan = t
        need = _tiled_need(tm_plan, tn, Hp, c_it, x_it, o_it)
        # TODO(synk): for truly enormous H (a single (Hp, 128) weight block over
        #             VMEM) the contraction (K) dimension would need tiling too.
    else:
        need = _resident_need(tm_plan, Hp, c_it, x_it, o_it)

    vmem_limit = int(min(max(need * 5 // 4, 32 * 1024 * 1024), budget))
    return dict(H=H, Hp=Hp, pack=pack, tm=tm_plan, tn=tn, tiled=tiled,
                compute_dtype=jnp.dtype(compute_dtype), vmem_limit=vmem_limit)


def _prepare_weights(w1, b1, w2, b2, plan):
    """Pad to (Hp, Hp), transpose to (in, out) and cast ONCE (hoisted off the hot path)."""
    H, Hp, cd = plan["H"], plan["Hp"], plan["compute_dtype"]
    w1_t = jnp.zeros((Hp, Hp), cd).at[:H, :H].set(jnp.asarray(w1, cd).T)
    w2_t = jnp.zeros((Hp, Hp), cd).at[:H, :H].set(jnp.asarray(w2, cd).T)
    b1_r = jnp.zeros((1, Hp), jnp.float32).at[0, :H].set(jnp.asarray(b1, jnp.float32))
    b2_r = jnp.zeros((1, Hp), jnp.float32).at[0, :H].set(jnp.asarray(b2, jnp.float32))
    if plan["tiled"]:
        return (jnp.stack([w1_t, w2_t]), jnp.stack([b1_r, b2_r]))  # (2,Hp,Hp),(2,1,Hp)
    return (w1_t, b1_r, w2_t, b2_r)


# ---------------------------------------------------------------------------
# pallas_call wrappers
# ---------------------------------------------------------------------------

_SINGLE_BUFFER_WEIGHTS = True    # flipped off if this jax build rejects pl.Buffered(1)


def _const_spec(shape, single_buffer):
    """BlockSpec for a block whose index never changes (fetched exactly once)."""
    index_map = lambda i: (0,) * len(shape)
    if single_buffer:
        try:
            return pl.BlockSpec(shape, index_map, pipeline_mode=pl.Buffered(1))
        except TypeError:                         # older BlockSpec signature
            pass
    return pl.BlockSpec(shape, index_map)


def _resident_call(x_in, params, plan, tm, n_row, row_sem, out_dtype, cost,
                   single_buffer):
    Hp = plan["Hp"]
    return pl.pallas_call(
        _resident_kernel,
        out_shape=jax.ShapeDtypeStruct((x_in.shape[0], Hp), out_dtype),
        grid_spec=pltpu.PrefetchScalarGridSpec(
            num_scalar_prefetch=0,
            grid=(n_row,),
            in_specs=[
                pl.BlockSpec((tm, Hp), lambda i: (i, 0)),   # x row tile (streamed)
                _const_spec((Hp, Hp), single_buffer),       # W1^T (resident)
                _const_spec((1, Hp), single_buffer),        # b1
                _const_spec((Hp, Hp), single_buffer),       # W2^T (resident)
                _const_spec((1, Hp), single_buffer),        # b2
            ],
            out_specs=pl.BlockSpec((tm, Hp), lambda i: (i, 0)),
        ),
        compiler_params=pltpu.CompilerParams(
            dimension_semantics=(row_sem,),
            vmem_limit_bytes=plan["vmem_limit"]),
        cost_estimate=cost,
    )(x_in, *params)


def _tiled_call(x_in, params, plan, tm, n_row, row_sem, out_dtype, cost):
    Hp, tn = plan["Hp"], plan["tn"]
    n_col = Hp // tn
    w, b = params
    return pl.pallas_call(
        _tiled_kernel,
        out_shape=jax.ShapeDtypeStruct((x_in.shape[0], Hp), out_dtype),
        grid_spec=pltpu.PrefetchScalarGridSpec(
            num_scalar_prefetch=0,
            grid=(n_row, 2, n_col),
            in_specs=[
                pl.BlockSpec((tm, Hp), lambda i, p, j: (i, 0)),      # x (full width)
                pl.BlockSpec((tm, tn), lambda i, p, j: (i, j)),      # x col (residual)
                pl.BlockSpec((1, Hp, tn), lambda i, p, j: (p, 0, j)),  # W1^T/W2^T cols
                pl.BlockSpec((1, 1, tn), lambda i, p, j: (p, 0, j)),   # b1/b2 cols
            ],
            out_specs=pl.BlockSpec((tm, tn), lambda i, p, j: (i, j)),
            scratch_shapes=[pltpu.VMEM((n_col, tm, tn), plan["compute_dtype"])],
        ),
        compiler_params=pltpu.CompilerParams(
            dimension_semantics=(row_sem, "arbitrary", "arbitrary"),
            vmem_limit_bytes=plan["vmem_limit"]),
        cost_estimate=cost,
    )(x_in, x_in, w, b)


def _apply(x, params, plan, out_dtype=None):
    global _SINGLE_BUFFER_WEIGHTS
    H, Hp, pack, tm = plan["H"], plan["Hp"], plan["pack"], plan["tm"]
    if x.shape[-1] != H:
        raise ValueError(f"expected last dim {H}, got {x.shape[-1]}")
    out_dtype = jnp.dtype(out_dtype) if out_dtype is not None else x.dtype

    orig_shape = x.shape
    x2d = x.reshape(-1, H)
    rows = x2d.shape[0]

    tm_eff = min(tm, _round_up(rows, pack))
    rows_p = _round_up(rows, tm_eff)
    n_row = rows_p // tm_eff
    # Small grids: keep on one core so both TCs don't each DMA full weight copies.
    row_sem = "parallel" if n_row > 4 else "arbitrary"

    aligned = (Hp == H) and (rows_p == rows)
    x_in = x2d if aligned else (
        jnp.zeros((rows_p, Hp), x.dtype).at[:rows, :H].set(x2d))

    c_it = plan["compute_dtype"].itemsize
    cost = pl.CostEstimate(
        flops=4 * rows_p * Hp * Hp,
        transcendentals=0,
        bytes_accessed=(2 * Hp * Hp * c_it + 2 * Hp * 4
                        + rows_p * Hp * (x_in.dtype.itemsize + out_dtype.itemsize)))

    if plan["tiled"]:
        out_p = _tiled_call(x_in, params, plan, tm_eff, n_row, row_sem,
                            out_dtype, cost)
    elif _SINGLE_BUFFER_WEIGHTS:
        try:
            out_p = _resident_call(x_in, params, plan, tm_eff, n_row, row_sem,
                                   out_dtype, cost, single_buffer=True)
        except Exception:
            _SINGLE_BUFFER_WEIGHTS = False       # retry without Buffered(1)
            out_p = _resident_call(x_in, params, plan, tm_eff, n_row, row_sem,
                                   out_dtype, cost, single_buffer=False)
    else:
        out_p = _resident_call(x_in, params, plan, tm_eff, n_row, row_sem,
                               out_dtype, cost, single_buffer=False)

    if aligned:
        return out_p.reshape(orig_shape)
    return out_p[:rows, :H].reshape(orig_shape)


# ---------------------------------------------------------------------------
# public API
# ---------------------------------------------------------------------------

def make_resnet_block(w1, b1, w2, b2, *, compute_dtype=None, tm=512,
                      act_dtype=jnp.float32, out_dtype=None, force_tiled=False):
    """Prepare (pad/transpose/cast) the weights ONCE and return apply(x)."""
    w1 = jnp.asarray(w1); b1 = jnp.asarray(b1)
    w2 = jnp.asarray(w2); b2 = jnp.asarray(b2)
    H = w1.shape[0]
    cd = jnp.dtype(compute_dtype) if compute_dtype is not None else w1.dtype
    od = jnp.dtype(out_dtype) if out_dtype is not None else None
    out_it = od.itemsize if od is not None else jnp.dtype(act_dtype).itemsize
    plan = _plan(H, compute_dtype=cd, tm=tm,
                 act_itemsize=jnp.dtype(act_dtype).itemsize,
                 out_itemsize=out_it, force_tiled=force_tiled)
    params = _prepare_weights(w1, b1, w2, b2, plan)
    return functools.partial(_apply, params=params, plan=plan, out_dtype=od)


def resnet_block(x, w1, b1, w2, b2, *, compute_dtype=None, tm=512,
                 out_dtype=None, force_tiled=False):
    """One-shot wrapper. For repeated calls with fixed weights prefer
    make_resnet_block(...) so the weight transpose/pad/cast (a full HBM round
    trip of both matrices) is paid only once."""
    x = jnp.asarray(x)
    cd = jnp.dtype(compute_dtype) if compute_dtype is not None else x.dtype
    od = jnp.dtype(out_dtype) if out_dtype is not None else x.dtype
    plan = _plan(x.shape[-1], compute_dtype=cd, tm=tm,
                 act_itemsize=x.dtype.itemsize, out_itemsize=od.itemsize,
                 force_tiled=force_tiled)
    params = _prepare_weights(jnp.asarray(w1), jnp.asarray(b1),
                              jnp.asarray(w2), jnp.asarray(b2), plan)
    return _apply(x, params, plan, out_dtype=od)


def resnet_block_ref(x, w1, b1, w2, b2):
    h = jnp.maximum(x @ w1.T + b1, 0.0)
    return jnp.maximum(h @ w2.T + b2 + x, 0.0)


# ---------------------------------------------------------------------------

if __name__ == "__main__":
    key = jax.random.PRNGKey(0)
    batch, seq, hidden = 2, 8, 32
    k_x, k_w1, k_b1, k_w2, k_b2, k_x2 = jax.random.split(key, 6)

    # PyTorch nn.Linear default init: U[-1/sqrt(fan_in), +1/sqrt(fan_in)]
    bound = 1.0 / (hidden ** 0.5)
    w1 = jax.random.uniform(k_w1, (hidden, hidden), jnp.float32, -bound, bound)
    b1 = jax.random.uniform(k_b1, (hidden,), jnp.float32, -bound, bound)
    w2 = jax.random.uniform(k_w2, (hidden, hidden), jnp.float32, -bound, bound)
    b2 = jax.random.uniform(k_b2, (hidden,), jnp.float32, -bound, bound)
    x = jax.random.normal(k_x, (batch, seq, hidden), jnp.float32)

    ref = resnet_block_ref(x.reshape(-1, hidden), w1, b1, w2, b2).reshape(x.shape)

    # 1) resident-weight path, f32 compute (bit-compatible with the reference).
    out = jax.block_until_ready(resnet_block(x, w1, b1, w2, b2))
    assert out.shape == x.shape and out.dtype == x.dtype
    assert jnp.allclose(out, ref, atol=1e-5, rtol=1e-5), "resident f32 mismatch"

    # 2) prepared-weights factory (hoisted transpose/pad) + bf16 MXU path.
    #    Residual still uses f32 x; only the matmul operands are bf16.
    block_bf16 = make_resnet_block(w1, b1, w2, b2, compute_dtype=jnp.bfloat16)
    out_bf16 = jax.block_until_ready(block_bf16(x))
    assert jnp.allclose(out_bf16, ref, atol=3e-2, rtol=3e-2), "bf16 path mismatch"

    # 3) column-tiled (streamed-weights) path, forced at small size for coverage.
    out_tiled = jax.block_until_ready(
        resnet_block(x, w1, b1, w2, b2, force_tiled=True))
    assert jnp.allclose(out_tiled, ref, atol=1e-5, rtol=1e-5), "tiled path mismatch"

    # 4) already-aligned fast path (H multiple of 128: no pad / slice copies).
    hidden2 = 128
    bound2 = 1.0 / (hidden2 ** 0.5)
    w1a = jax.random.uniform(k_w1, (hidden2, hidden2), jnp.float32, -bound2, bound2)
    b1a = jax.random.uniform(k_b1, (hidden2,), jnp.float32, -bound2, bound2)
    w2a = jax.random.uniform(k_w2, (hidden2, hidden2), jnp.float32, -bound2, bound2)
    b2a = jax.random.uniform(k_b2, (hidden2,), jnp.float32, -bound2, bound2)
    xa = jax.random.normal(k_x2, (batch, seq, hidden2), jnp.float32)
    ref_a = resnet_block_ref(xa.reshape(-1, hidden2),
                             w1a, b1a, w2a, b2a).reshape(xa.shape)
    out_a = jax.block_until_ready(resnet_block(xa, w1a, b1a, w2a, b2a))
    assert jnp.allclose(out_a, ref_a, atol=1e-5, rtol=1e-5), "aligned path mismatch"

    print("KERNEL_OK")
</pallas_src>

<mosaic_0001>
module attributes {stable_mosaic.version = 11 : i64} {
  func.func @_resident_kernel(%arg0: i32, %arg1: memref<16x128xf32, #tpu.memory_space<vmem>>, %arg2: memref<128x128xf32, #tpu.memory_space<vmem>>, %arg3: memref<1x128xf32, #tpu.memory_space<vmem>>, %arg4: memref<128x128xf32, #tpu.memory_space<vmem>>, %arg5: memref<1x128xf32, #tpu.memory_space<vmem>>, %arg6: memref<16x128xf32, #tpu.memory_space<vmem>>) attributes {dimension_semantics = [#tpu.dimension_semantics<arbitrary>], iteration_bounds = array<i64: 1>, scalar_prefetch = 0 : i64, scratch_operands = 0 : i64, tpu.core_type = #tpu.core_type<tc>, window_params = [{transform_indices = @transform_0, window_bounds = array<i64: 16, 128>}, {pipeline_mode = #tpu.pipeline_mode<synchronous>, transform_indices = @transform_1, window_bounds = array<i64: 128, 128>}, {pipeline_mode = #tpu.pipeline_mode<synchronous>, transform_indices = @transform_2, window_bounds = array<i64: 1, 128>}, {pipeline_mode = #tpu.pipeline_mode<synchronous>, transform_indices = @transform_3, window_bounds = array<i64: 128, 128>}, {pipeline_mode = #tpu.pipeline_mode<synchronous>, transform_indices = @transform_4, window_bounds = array<i64: 1, 128>}, {transform_indices = @transform_5, window_bounds = array<i64: 16, 128>}]} {
    %c0 = arith.constant 0 : index
    %c0_0 = arith.constant 0 : index
    %0 = vector.load %arg1[%c0, %c0_0] : memref<16x128xf32, #tpu.memory_space<vmem>>, vector<16x128xf32>
    %c0_1 = arith.constant 0 : index
    %c0_2 = arith.constant 0 : index
    %1 = vector.load %arg2[%c0_1, %c0_2] : memref<128x128xf32, #tpu.memory_space<vmem>>, vector<128x128xf32>
    %cst = arith.constant dense<0.000000e+00> : vector<16x128xf32>
    %2 = tpu.matmul %0, %1, %cst {dimension_numbers = #tpu.dot_dimension_numbers<[1], [0], [0], [1], [0, 0, 1, 1], [], []>} : vector<16x128xf32>, vector<128x128xf32>, vector<16x128xf32> -> vector<16x128xf32>
    %c0_3 = arith.constant 0 : index
    %c0_4 = arith.constant 0 : index
    %3 = vector.load %arg3[%c0_3, %c0_4] : memref<1x128xf32, #tpu.memory_space<vmem>>, vector<1x128xf32>
    %4 = vector.broadcast %3 : vector<1x128xf32> to vector<16x128xf32>
    %5 = arith.addf %2, %4 : vector<16x128xf32>
    %cst_5 = arith.constant 0.000000e+00 : f32
    %6 = vector.broadcast %cst_5 : f32 to vector<16x128xf32>
    %7 = arith.maximumf %5, %6 : vector<16x128xf32>
    %c0_6 = arith.constant 0 : index
    %c0_7 = arith.constant 0 : index
    %8 = vector.load %arg4[%c0_6, %c0_7] : memref<128x128xf32, #tpu.memory_space<vmem>>, vector<128x128xf32>
    %cst_8 = arith.constant dense<0.000000e+00> : vector<16x128xf32>
    %9 = tpu.matmul %7, %8, %cst_8 {dimension_numbers = #tpu.dot_dimension_numbers<[1], [0], [0], [1], [0, 0, 1, 1], [], []>} : vector<16x128xf32>, vector<128x128xf32>, vector<16x128xf32> -> vector<16x128xf32>
    %c0_9 = arith.constant 0 : index
    %c0_10 = arith.constant 0 : index
    %10 = vector.load %arg5[%c0_9, %c0_10] : memref<1x128xf32, #tpu.memory_space<vmem>>, vector<1x128xf32>
    %11 = vector.broadcast %10 : vector<1x128xf32> to vector<16x128xf32>
    %12 = arith.addf %9, %11 : vector<16x128xf32>
    %13 = arith.addf %12, %0 : vector<16x128xf32>
    %cst_11 = arith.constant 0.000000e+00 : f32
    %14 = vector.broadcast %cst_11 : f32 to vector<16x128xf32>
    %15 = arith.maximumf %13, %14 : vector<16x128xf32>
    %c0_12 = arith.constant 0 : index
    %c0_13 = arith.constant 0 : index
    %16 = vector.load %arg6[%c0_12, %c0_13] : memref<16x128xf32, #tpu.memory_space<vmem>>, vector<16x128xf32>
    tpu.vector_store %arg6[%c0_12, %c0_13], %15 {strides = array<i32>} : memref<16x128xf32, #tpu.memory_space<vmem>>, vector<16x128xf32>,
    return
  }
  func.func @transform_0(%arg0: i32) -> (i32, i32) {
    %c0_i32 = arith.constant 0 : i32
    %c0_i32_0 = arith.constant 0 : i32
    return %arg0, %c0_i32 : i32, i32
  }
  func.func @transform_1(%arg0: i32) -> (i32, i32) {
    %c0_i32 = arith.constant 0 : i32
    %c0_i32_0 = arith.constant 0 : i32
    %c0_i32_1 = arith.constant 0 : i32
    return %c0_i32, %c0_i32_0 : i32, i32
  }
  func.func @transform_2(%arg0: i32) -> (i32, i32) {
    %c0_i32 = arith.constant 0 : i32
    %c0_i32_0 = arith.constant 0 : i32
    %c0_i32_1 = arith.constant 0 : i32
    return %c0_i32, %c0_i32_0 : i32, i32
  }
  func.func @transform_3(%arg0: i32) -> (i32, i32) {
    %c0_i32 = arith.constant 0 : i32
    %c0_i32_0 = arith.constant 0 : i32
    %c0_i32_1 = arith.constant 0 : i32
    return %c0_i32, %c0_i32_0 : i32, i32
  }
  func.func @transform_4(%arg0: i32) -> (i32, i32) {
    %c0_i32 = arith.constant 0 : i32
    %c0_i32_0 = arith.constant 0 : i32
    %c0_i32_1 = arith.constant 0 : i32
    return %c0_i32, %c0_i32_0 : i32, i32
  }
  func.func @transform_5(%arg0: i32) -> (i32, i32) {
    %c0_i32 = arith.constant 0 : i32
    %c0_i32_0 = arith.constant 0 : i32
    return %arg0, %c0_i32 : i32, i32
  }
}

module attributes {stable_mosaic.version = 11 : i64} {
  func.func @_resident_kernel(%arg0: i32, %arg1: memref<16x128xf32, #tpu.memory_space<vmem>>, %arg2: memref<128x128xf32, #tpu.memory_space<vmem>>, %arg3: memref<1x128xf32, #tpu.memory_space<vmem>>, %arg4: memref<128x128xf32, #tpu.memory_space<vmem>>, %arg5: memref<1x128xf32, #tpu.memory_space<vmem>>, %arg6: memref<16x128xf32, #tpu.memory_space<vmem>>) attributes {dimension_semantics = [#tpu.dimension_semantics<arbitrary>], iteration_bounds = array<i64: 1>, scalar_prefetch = 0 : i64, scratch_operands = 0 : i64, tpu.core_type = #tpu.core_type<tc>, window_params = [{transform_indices = @transform_0, window_bounds = array<i64: 16, 128>}, {pipeline_mode = #tpu.pipeline_mode<synchronous>, transform_indices = @transform_1, window_bounds = array<i64: 128, 128>}, {pipeline_mode = #tpu.pipeline_mode<synchronous>, transform_indices = @transform_2, window_bounds = array<i64: 1, 128>}, {pipeline_mode = #tpu.pipeline_mode<synchronous>, transform_indices = @transform_3, window_bounds = array<i64: 128, 128>}, {pipeline_mode = #tpu.pipeline_mode<synchronous>, transform_indices = @transform_4, window_bounds = array<i64: 1, 128>}, {transform_indices = @transform_5, window_bounds = array<i64: 16, 128>}]} {
    %c0 = arith.constant 0 : index
    %c0_0 = arith.constant 0 : index
    %0 = vector.load %arg1[%c0, %c0_0] : memref<16x128xf32, #tpu.memory_space<vmem>>, vector<16x128xf32>
    %c0_1 = arith.constant 0 : index
    %c0_2 = arith.constant 0 : index
    %1 = vector.load %arg2[%c0_1, %c0_2] : memref<128x128xf32, #tpu.memory_space<vmem>>, vector<128x128xf32>
    %cst = arith.constant dense<0.000000e+00> : vector<16x128xf32>
    %2 = tpu.matmul %0, %1, %cst {dimension_numbers = #tpu.dot_dimension_numbers<[1], [0], [0], [1], [0, 0, 1, 1], [], []>} : vector<16x128xf32>, vector<128x128xf32>, vector<16x128xf32> -> vector<16x128xf32>
    %c0_3 = arith.constant 0 : index
    %c0_4 = arith.constant 0 : index
    %3 = vector.load %arg3[%c0_3, %c0_4] : memref<1x128xf32, #tpu.memory_space<vmem>>, vector<1x128xf32>
    %4 = vector.broadcast %3 : vector<1x128xf32> to vector<16x128xf32>
    %5 = arith.addf %2, %4 : vector<16x128xf32>
    %cst_5 = arith.constant 0.000000e+00 : f32
    %6 = vector.broadcast %cst_5 : f32 to vector<16x128xf32>
    %7 = arith.maximumf %5, %6 : vector<16x128xf32>
    %c0_6 = arith.constant 0 : index
    %c0_7 = arith.constant 0 : index
    %8 = vector.load %arg4[%c0_6, %c0_7] : memref<128x128xf32, #tpu.memory_space<vmem>>, vector<128x128xf32>
    %cst_8 = arith.constant dense<0.000000e+00> : vector<16x128xf32>
    %9 = tpu.matmul %7, %8, %cst_8 {dimension_numbers = #tpu.dot_dimension_numbers<[1], [0], [0], [1], [0, 0, 1, 1], [], []>} : vector<16x128xf32>, vector<128x128xf32>, vector<16x128xf32> -> vector<16x128xf32>
    %c0_9 = arith.constant 0 : index
    %c0_10 = arith.constant 0 : index
    %10 = vector.load %arg5[%c0_9, %c0_10] : memref<1x128xf32, #tpu.memory_space<vmem>>, vector<1x128xf32>
    %11 = vector.broadcast %10 : vector<1x128xf32> to vector<16x128xf32>
    %12 = arith.addf %9, %11 : vector<16x128xf32>
    %13 = arith.addf %12, %0 : vector<16x128xf32>
    %cst_11 = arith.constant 0.000000e+00 : f32
    %14 = vector.broadcast %cst_11 : f32 to vector<16x128xf32>
    %15 = arith.maximumf %13, %14 : vector<16x128xf32>
    %c0_12 = arith.constant 0 : index
    %c0_13 = arith.constant 0 : index
    %16 = vector.load %arg6[%c0_12, %c0_13] : memref<16x128xf32, #tpu.memory_space<vmem>>, vector<16x128xf32>
    tpu.vector_store %arg6[%c0_12, %c0_13], %15 {strides = array<i32>} : memref<16x128xf32, #tpu.memory_space<vmem>>, vector<16x128xf32>,
    return
  }
  func.func @transform_0(%arg0: i32) -> (i32, i32) {
    %c0_i32 = arith.constant 0 : i32
    %c0_i32_0 = arith.constant 0 : i32
    return %arg0, %c0_i32 : i32, i32
  }
  func.func @transform_1(%arg0: i32) -> (i32, i32) {
    %c0_i32 = arith.constant 0 : i32
    %c0_i32_0 = arith.constant 0 : i32
    %c0_i32_1 = arith.constant 0 : i32
    return %c0_i32, %c0_i32_0 : i32, i32
  }
  func.func @transform_2(%arg0: i32) -> (i32, i32) {
    %c0_i32 = arith.constant 0 : i32
    %c0_i32_0 = arith.constant 0 : i32
    %c0_i32_1 = arith.constant 0 : i32
    return %c0_i32, %c0_i32_0 : i32, i32
  }
  func.func @transform_3(%arg0: i32) -> (i32, i32) {
    %c0_i32 = arith.constant 0 : i32
    %c0_i32_0 = arith.constant 0 : i32
    %c0_i32_1 = arith.constant 0 : i32
    return %c0_i32, %c0_i32_0 : i32, i32
  }
  func.func @transform_4(%arg0: i32) -> (i32, i32) {
    %c0_i32 = arith.constant 0 : i32
    %c0_i32_0 = arith.constant 0 : i32
    %c0_i32_1 = arith.constant 0 : i32
    return %c0_i32, %c0_i32_0 : i32, i32
  }
  func.func @transform_5(%arg0: i32) -> (i32, i32) {
    %c0_i32 = arith.constant 0 : i32
    %c0_i32_0 = arith.constant 0 : i32
    return %arg0, %c0_i32 : i32, i32
  }
}

</mosaic_0001>

<bundles_post_ra>
// kernel: tpu_custom_call.1
= control target key start
LH: loop header
LB: loop body
LE: loop exit
PB: predicated region body
PF: predicated region fallthrough
CT: control target
= control target key end

     0   :  { %10 = vsyncpa [#allocation3], 0  ;;  %s671_s0 = inlined_call_operand.hbm [shape: f32[16,128], index: 0, kind: input, shape index: {}]   ;;  %s672_s1 = inlined_call_operand.hbm [shape: f32[128,128], index: 1, kind: input, shape index: {}]   ;;  %s673_s2 = inlined_call_operand.vmem [shape: f32[1,128], index: 2, kind: input, shape index: {}]   ;;  %s674_s3 = inlined_call_operand.hbm [shape: f32[128,128], index: 3, kind: input, shape index: {}]   ;;  %s675_s4 = inlined_call_operand.vmem [shape: f32[1,128], index: 4, kind: input, shape index: {}]   ;;  %s676_s5 = inlined_call_operand.hbm [shape: f32[16,128], index: 5, kind: output, shape index: {}]  }
   0x1   :  { %11 = vsyncpa [#allocation6], 0 }
   0x2   :  { %12 = vsyncpa [#allocation4], 0  ;;  %s558_s18 = smov [#allocation5]   ;;  %s559_s20 = smov [#allocation2]  }
   0x3   :  { %s30_s19 = sshll.u32 %s558_s18, 4  ;;  %s18_s21 = sshll.u32 %s559_s20, 4  ;;  %s31_s19 = int_to_ptr.vmem [resolvable:$true] %s30_s19  ;;  %s594_s21 = int_to_ptr.vmem [resolvable:$true] %s18_s21 }
   0x4   :  { %s464_s24 = scalar_lea.hbm %s672_s1, 2048 }
   0x5   :  { %p465_p0 = scmp.ne.s32.totalorder %s672_s1, %s464_s24  ;;  %p468_p1 = scmp.lt.u32.totalorder %s464_s24, %s672_s1 }
   0x7   :  { %p470_p2 = pnand %p468_p1, %p465_p0 }
   0x9   :  { %473 = shalt.err (!%p470_p2)
}
   0xa   :  { %s474_s29 = scalar_lea.vmem %s31_s19, 2048  ;;  %p479_p4 = scmp.lt.s32.totalorder %s31_s19, %s31_s19 }
   0xb   :  { %p475_p3 = scmp.ne.s32.totalorder %s31_s19, %s474_s29  ;;  %p480_p5 = scmp.lt.s32.totalorder %s474_s29, %s474_s29 }
   0xd   :  { %p481_p6 = por %p480_p5, %p479_p4 }
   0xf   :  { %p482_p7 = pnand %p481_p6, %p475_p3 }
  0x11   :  { %485 = shalt.err (!%p482_p7)
}
  0x12   :  { %s560_s30 = smov 128   ;;  %s561_s6 = smov 8  }
  0x13   :  { %36 = dma.hbm_to_vmem [thread:$0]  %s672_s1, 2048, %s31_s19, [#allocation6], %s560_s30, %s560_s30, %s561_s6  }
  0x14   :  { %s486_s11 = scalar_lea.hbm %s671_s0, 256 }
  0x15   :  { %p487_p8 = scmp.ne.s32.totalorder %s671_s0, %s486_s11  ;;  %p490_p9 = scmp.lt.u32.totalorder %s486_s11, %s671_s0 }
  0x17   :  { %p492_p10 = pnand %p490_p9, %p487_p8 }
  0x19   :  { %495 = shalt.err (!%p492_p10)
}
  0x1a   :  { %s496_s16 = scalar_lea.vmem %s594_s21, 256  ;;  %p501_p12 = scmp.lt.s32.totalorder %s594_s21, %s594_s21 }
  0x1b   :  { %p497_p11 = scmp.ne.s32.totalorder %s594_s21, %s496_s16  ;;  %p502_p13 = scmp.lt.s32.totalorder %s496_s16, %s496_s16 }
  0x1d   :  { %p503_p0 = por %p502_p13, %p501_p12 }
  0x1f   :  { %p504_p1 = pnand %p503_p0, %p497_p11 }
  0x21   :  { %507 = shalt.err (!%p504_p1)
}
  0x22   :  { %24 = dma.hbm_to_vmem [thread:$0]  %s671_s0, 256, %s594_s21, [#allocation3], %s560_s30, %s560_s30, %s561_s6  }
  0x23   :  { %s562_s18 = smov [#allocation7]   ;;  %s508_s23 = scalar_lea.hbm %s674_s3, 2048 }
  0x24   :  { %s44_s19 = sshll.u32 %s562_s18, 4  ;;  %p509_p2 = scmp.ne.s32.totalorder %s674_s3, %s508_s23  ;;  %s45_s19 = int_to_ptr.vmem [resolvable:$true] %s44_s19 }
  0x25   :  { %p512_p3 = scmp.lt.u32.totalorder %s508_s23, %s674_s3 }
  0x27   :  { %p514_p4 = pnand %p512_p3, %p509_p2 }
  0x29   :  { %517 = shalt.err (!%p514_p4)
}
  0x2a   :  { %s518_s28 = scalar_lea.vmem %s45_s19, 2048  ;;  %p523_p6 = scmp.lt.s32.totalorder %s45_s19, %s45_s19 }
  0x2b   :  { %p519_p5 = scmp.ne.s32.totalorder %s45_s19, %s518_s28  ;;  %p524_p7 = scmp.lt.s32.totalorder %s518_s28, %s518_s28 }
  0x2d   :  { %p525_p8 = por %p524_p7, %p523_p6 }
  0x2f   :  { %p526_p9 = pnand %p525_p8, %p519_p5 }
  0x31   :  { %529 = shalt.err (!%p526_p9)
}
  0x32   :  { %50 = dma.hbm_to_vmem [thread:$0]  %s674_s3, 2048, %s45_s19, [#allocation6], %s560_s30, %s560_s30, %s561_s6  }
  0x33   :  { %552 = dma.done.wait [#allocation3], 256  }
  0x34   :  { %553 = vsyncadd [#allocation3], 4294967040 }
  0x35   :  { %554 = dma.done.wait [#allocation6], 4096  }
  0x36   :  { %555 = vsyncadd [#allocation6], 4294963200  ;;  %v64_v0 = vld [vmem:[#allocation5] sm:$0xff]  ;;  %v65_v1 = vld [vmem:[#allocation5 + $0x8] sm:$0xff]  ;;  %s563_s9 = smov [#allocation8]  }
  0x37   :  { %v66_v2 = vld [vmem:[#allocation5 + $0x10] sm:$0xff]  ;;  %v394_v3 = vpack.c.bf16 %v65_v1, %v64_v0  ;;  %v67_v4 = vld [vmem:[#allocation5 + $0x18] sm:$0xff]  ;;  %v68_v6 = vld [vmem:[#allocation5 + $0x20] sm:$0xff]  ;;  %s273_s10 = sshll.u32 %s563_s9, 4  ;;  %s274_s10 = int_to_ptr.vmem [resolvable:$true] %s273_s10 }
  0x38   :  { %v398_v5 = vpack.c.bf16 %v67_v4, %v66_v2  ;;  %v69_v7 = vld [vmem:[#allocation5 + $0x28] sm:$0xff]  ;;  %v70_v9 = vld [vmem:[#allocation5 + $0x30] sm:$0xff]  ;;  %v71_v10 = vld [vmem:[#allocation5 + $0x38] sm:$0xff]  ;;  %p535_p11 = scmp.lt.s32.totalorder %s274_s10, %s274_s10 }
  0x39   :  { %395 = vmatprep.subr.bf16.mxu0 %v394_v3  ;;  %v402_v8 = vpack.c.bf16 %v69_v7, %v68_v6  ;;  %v646_v11 = vld [vmem:[#allocation2] sm:$0xff]  ;;  %v164_v12 = vld [vmem:[#allocation7] sm:$0xff]  ;;  %v165_v13 = vld [vmem:[#allocation7 + $0x8] sm:$0xff]  ;;  %v406_v20 = vpack.c.bf16 %v71_v10, %v70_v9 }
  0x3a   :  { %397 = vmatpush3.bf16.msra.mxu0 %v394_v3  ;;  %356 = vmatprep.mubr.f32.mxu0 %v646_v11  ;;  %v166_v14 = vld [vmem:[#allocation7 + $0x10] sm:$0xff]  ;;  %v426_v15 = vpack.c.bf16 %v165_v13, %v164_v12  ;;  %v167_v16 = vld [vmem:[#allocation7 + $0x18] sm:$0xff]  ;;  %v168_v18 = vld [vmem:[#allocation7 + $0x20] sm:$0xff] }
  0x3b   :  { %399 = vmatprep.subr.bf16.mxu0 %v398_v5  ;;  %v430_v17 = vpack.c.bf16 %v167_v16, %v166_v14  ;;  %v169_v19 = vld [vmem:[#allocation7 + $0x28] sm:$0xff]  ;;  %v72_v21 = vld [vmem:[#allocation5 + $0x40] sm:$0xff]  ;;  %v170_v24 = vld [vmem:[#allocation7 + $0x30] sm:$0xff] }
  0x3c   :  { %427 = vmatprep.subr.bf16.mxu1 %v426_v15  ;;  %v73_v22 = vld [vmem:[#allocation5 + $0x48] sm:$0xff]  ;;  %v434_v23 = vpack.c.bf16 %v169_v19, %v168_v18  ;;  %v171_v25 = vld [vmem:[#allocation7 + $0x38] sm:$0xff]  ;;  %v74_v27 = vld [vmem:[#allocation5 + $0x50] sm:$0xff] }
  0x3d   :  { %429 = vmatpush3.bf16.msra.mxu1 %v426_v15  ;;  %v410_v26 = vpack.c.bf16 %v73_v22, %v72_v21  ;;  %v75_v28 = vld [vmem:[#allocation5 + $0x58] sm:$0xff]  ;;  %v438_v29 = vpack.c.bf16 %v171_v25, %v170_v24  ;;  %v172_v30 = vld [vmem:[#allocation7 + $0x40] sm:$0xff]  ;;  %v173_v31 = vld [vmem:[#allocation7 + $0x48] sm:$0xff] }
  0x3e   :  { %401 = vmatpush3.bf16.msra.mxu0 %v398_v5  ;;  %431 = vmatprep.subr.bf16.mxu1 %v430_v17  ;;  %v414_v32 = vpack.c.bf16 %v75_v28, %v74_v27  ;;  %v76_v33 = vld [vmem:[#allocation5 + $0x60] sm:$0xff]  ;;  %v77_v34 = vld [vmem:[#allocation5 + $0x68] sm:$0xff]  ;;  %v442_v35 = vpack.c.bf16 %v173_v31, %v172_v30  ;;  %v174_v36 = vld [vmem:[#allocation7 + $0x50] sm:$0xff] }
  0x3f   :  { %403 = vmatprep.subr.bf16.mxu0 %v402_v8  ;;  %v175_v37 = vld [vmem:[#allocation7 + $0x58] sm:$0xff]  ;;  %v418_v38 = vpack.c.bf16 %v77_v34, %v76_v33  ;;  %v78_v39 = vld [vmem:[#allocation5 + $0x70] sm:$0xff]  ;;  %v176_v42 = vld [vmem:[#allocation7 + $0x60] sm:$0xff] }
  0x40   :  { %v79_v40 = vld [vmem:[#allocation5 + $0x78] sm:$0xff]  ;;  %v446_v41 = vpack.c.bf16 %v175_v37, %v174_v36  ;;  %v177_v43 = vld [vmem:[#allocation7 + $0x68] sm:$0xff]  ;;  %v178_v47 = vld [vmem:[#allocation7 + $0x70] sm:$0xff] }
  0x41   :  { %433 = vmatpush3.bf16.msra.mxu1 %v430_v17  ;;  %v422_v44 = vpack.c.bf16 %v79_v40, %v78_v39  ;;  %v450_v45 = vpack.c.bf16 %v177_v43, %v176_v42  ;;  %v63_v46 = vld [vmem:[#allocation2 + $0x8] sm:$0xff]  ;;  %v286_v50 = vld [vmem:[%s673_s2] ss:$0 sm:$0xff]  ;;  %s530_s2 = scalar_lea.vmem %s274_s10, 256 }
  0x42   :  { %405 = vmatpush3.bf16.msra.mxu0 %v402_v8  ;;  %435 = vmatprep.subr.bf16.mxu1 %v434_v23  ;;  %v179_v48 = vld [vmem:[#allocation7 + $0x78] sm:$0xff]  ;;  %v287_v57 = vld [vmem:[%s675_s4] ss:$0 sm:$0xff]  ;;  %p531_p10 = scmp.ne.s32.totalorder %s274_s10, %s530_s2  ;;  %p536_p12 = scmp.lt.s32.totalorder %s530_s2, %s530_s2 }
  0x43   :  { %407 = vmatprep.subr.bf16.mxu0 %v406_v20  ;;  %v454_v49 = vpack.c.bf16 %v179_v48, %v178_v47 }
  0x44   :  { %p537_p13 = por %p536_p12, %p535_p11 }
  0x45   :  { %437 = vmatpush3.bf16.msra.mxu1 %v434_v23 }
  0x46   :  { %409 = vmatpush3.bf16.msra.mxu0 %v406_v20  ;;  %439 = vmatprep.subr.bf16.mxu1 %v438_v29  ;;  %p538_p0 = pnand %p537_p13, %p531_p10 }
  0x47   :  { %411 = vmatprep.subr.bf16.mxu0 %v410_v26 }
  0x49   :  { %441 = vmatpush3.bf16.msra.mxu1 %v438_v29 }
  0x4a   :  { %413 = vmatpush3.bf16.msra.mxu0 %v410_v26  ;;  %443 = vmatprep.subr.bf16.mxu1 %v442_v35 }
  0x4b   :  { %415 = vmatprep.subr.bf16.mxu0 %v414_v32 }
  0x4d   :  { %445 = vmatpush3.bf16.msra.mxu1 %v442_v35 }
  0x4e   :  { %417 = vmatpush3.bf16.msra.mxu0 %v414_v32  ;;  %447 = vmatprep.subr.bf16.mxu1 %v446_v41 }
  0x4f   :  { %419 = vmatprep.subr.bf16.mxu0 %v418_v38 }
  0x51   :  { %449 = vmatpush3.bf16.msra.mxu1 %v446_v41 }
  0x52   :  { %421 = vmatpush3.bf16.msra.mxu0 %v418_v38  ;;  %451 = vmatprep.subr.bf16.mxu1 %v450_v45 }
  0x53   :  { %423 = vmatprep.subr.bf16.mxu0 %v422_v44 }
  0x55   :  { %453 = vmatpush3.bf16.msra.mxu1 %v450_v45 }
  0x56   :  { %425 = vmatpush3.bf16.msra.mxu0 %v422_v44  ;;  %455 = vmatprep.subr.bf16.mxu1 %v454_v49 }
  0x59   :  { %357 = vmatmul.mubr.f32.vlgmr.msra.gmra.mrb[0].mxu0 %v63_v46  ;;  %457 = vmatpush3.bf16.msra.mxu1 %v454_v49 }
 0x12c   :  { %v358_v51 = vpop.f32.mrb[0].mxu0 }
 0x12d   :  { %v159_v52 = vadd.f32 %v358_v51, %v286_v50  ;;  %v153_v53 = vpop.f32.mrb[1].mxu0 }
 0x12e   :  { %v154_v54 = vadd.f32 %v286_v50, %v153_v53 }
 0x12f   :  { %v163_v56 = vmax.f32 %v159_v52, 0.0 }
 0x130   :  { %v162_v55 = vmax.f32 %v154_v54, 0.0 }
 0x132   :  { %391 = vmatprep.mubr.f32.mxu1 %v162_v55 }
 0x133   :  { %392 = vmatmul.mubr.f32.vlgmr.msra.gmra.mrb[0].mxu1 %v163_v56 }
 0x206   :  { %v393_v58 = vpop.f32.mrb[0].mxu1 }
 0x207   :  { %v259_v59 = vadd.f32 %v393_v58, %v287_v57  ;;  %v253_v60 = vpop.f32.mrb[1].mxu1 }
 0x208   :  { %v254_v61 = vadd.f32 %v287_v57, %v253_v60 }
 0x209   :  { %v263_v62 = vadd.f32 %v259_v59, %v63_v46 }
 0x20a   :  { %v262_v63 = vadd.f32 %v254_v61, %v646_v11 }
 0x20b   :  { %v265_v0 = vmax.f32 %v263_v62, 0.0 }
 0x20c   :  { %v264_v1 = vmax.f32 %v262_v63, 0.0 }
 0x20d   :  { %267 = vst [vmem:[#allocation8 + $0x8] sm:$0xff] %v265_v0 }
 0x20e   :  { %266 = vst [vmem:[#allocation8] sm:$0xff] %v264_v1 }
 0x20f   :  { %541 = shalt.err (!%p538_p0)
}
 0x210   :  { %s542_s12 = scalar_lea.hbm %s676_s5, 256 }
 0x211   :  { %p543_p1 = scmp.ne.s32.totalorder %s676_s5, %s542_s12  ;;  %p546_p2 = scmp.lt.u32.totalorder %s542_s12, %s676_s5 }
 0x213   :  { %p548_p3 = pnand %p546_p2, %p543_p1 }
 0x215   :  { %551 = shalt.err (!%p548_p3)
}
 0x216   :  { %279 = dma.vmem_to_hbm [thread:$0]  %s274_s10, 256, %s676_s5, [#allocation4], %s560_s30, %s560_s30, %s561_s6  }
 0x217   :  { %556 = dma.done.wait [#allocation4], 256  }
 0x218   :  { %557 = vsyncadd [#allocation4], 4294967040 }
 0x219   :  { %283 = vsyncpa [#allocation3], 1 }
 0x21a   :  { %284 = vsyncpa [#allocation6], 1 }
 0x21b   :  { %285 = vsyncpa [#allocation4], 1 }

// kernel: tpu_custom_call.1
= control target key start
LH: loop header
LB: loop body
LE: loop exit
PB: predicated region body
PF: predicated region fallthrough
CT: control target
= control target key end

     0   :  { %10 = vsyncpa [#allocation3], 0  ;;  %s671_s0 = inlined_call_operand.hbm [shape: f32[16,128], index: 0, kind: input, shape index: {}]   ;;  %s672_s1 = inlined_call_operand.hbm [shape: f32[128,128], index: 1, kind: input, shape index: {}]   ;;  %s673_s2 = inlined_call_operand.vmem [shape: f32[1,128], index: 2, kind: input, shape index: {}]   ;;  %s674_s3 = inlined_call_operand.hbm [shape: f32[128,128], index: 3, kind: input, shape index: {}]   ;;  %s675_s4 = inlined_call_operand.vmem [shape: f32[1,128], index: 4, kind: input, shape index: {}]   ;;  %s676_s5 = inlined_call_operand.hbm [shape: f32[16,128], index: 5, kind: output, shape index: {}]  }
   0x1   :  { %11 = vsyncpa [#allocation6], 0 }
   0x2   :  { %12 = vsyncpa [#allocation4], 0  ;;  %s558_s18 = smov [#allocation5]   ;;  %s559_s20 = smov [#allocation2]  }
   0x3   :  { %s30_s19 = sshll.u32 %s558_s18, 4  ;;  %s18_s21 = sshll.u32 %s559_s20, 4  ;;  %s31_s19 = int_to_ptr.vmem [resolvable:$true] %s30_s19  ;;  %s594_s21 = int_to_ptr.vmem [resolvable:$true] %s18_s21 }
   0x4   :  { %s464_s24 = scalar_lea.hbm %s672_s1, 2048 }
   0x5   :  { %p465_p0 = scmp.ne.s32.totalorder %s672_s1, %s464_s24  ;;  %p468_p1 = scmp.lt.u32.totalorder %s464_s24, %s672_s1 }
   0x7   :  { %p470_p2 = pnand %p468_p1, %p465_p0 }
   0x9   :  { %473 = shalt.err (!%p470_p2)
}
   0xa   :  { %s474_s29 = scalar_lea.vmem %s31_s19, 2048  ;;  %p479_p4 = scmp.lt.s32.totalorder %s31_s19, %s31_s19 }
   0xb   :  { %p475_p3 = scmp.ne.s32.totalorder %s31_s19, %s474_s29  ;;  %p480_p5 = scmp.lt.s32.totalorder %s474_s29, %s474_s29 }
   0xd   :  { %p481_p6 = por %p480_p5, %p479_p4 }
   0xf   :  { %p482_p7 = pnand %p481_p6, %p475_p3 }
  0x11   :  { %485 = shalt.err (!%p482_p7)
}
  0x12   :  { %s560_s30 = smov 128   ;;  %s561_s6 = smov 8  }
  0x13   :  { %36 = dma.hbm_to_vmem [thread:$0]  %s672_s1, 2048, %s31_s19, [#allocation6], %s560_s30, %s560_s30, %s561_s6  }
  0x14   :  { %s486_s11 = scalar_lea.hbm %s671_s0, 256 }
  0x15   :  { %p487_p8 = scmp.ne.s32.totalorder %s671_s0, %s486_s11  ;;  %p490_p9 = scmp.lt.u32.totalorder %s486_s11, %s671_s0 }
  0x17   :  { %p492_p10 = pnand %p490_p9, %p487_p8 }
  0x19   :  { %495 = shalt.err (!%p492_p10)
}
  0x1a   :  { %s496_s16 = scalar_lea.vmem %s594_s21, 256  ;;  %p501_p12 = scmp.lt.s32.totalorder %s594_s21, %s594_s21 }
  0x1b   :  { %p497_p11 = scmp.ne.s32.totalorder %s594_s21, %s496_s16  ;;  %p502_p13 = scmp.lt.s32.totalorder %s496_s16, %s496_s16 }
  0x1d   :  { %p503_p0 = por %p502_p13, %p501_p12 }
  0x1f   :  { %p504_p1 = pnand %p503_p0, %p497_p11 }
  0x21   :  { %507 = shalt.err (!%p504_p1)
}
  0x22   :  { %24 = dma.hbm_to_vmem [thread:$0]  %s671_s0, 256, %s594_s21, [#allocation3], %s560_s30, %s560_s30, %s561_s6  }
  0x23   :  { %s562_s18 = smov [#allocation7]   ;;  %s508_s23 = scalar_lea.hbm %s674_s3, 2048 }
  0x24   :  { %s44_s19 = sshll.u32 %s562_s18, 4  ;;  %p509_p2 = scmp.ne.s32.totalorder %s674_s3, %s508_s23  ;;  %s45_s19 = int_to_ptr.vmem [resolvable:$true] %s44_s19 }
  0x25   :  { %p512_p3 = scmp.lt.u32.totalorder %s508_s23, %s674_s3 }
  0x27   :  { %p514_p4 = pnand %p512_p3, %p509_p2 }
  0x29   :  { %517 = shalt.err (!%p514_p4)
}
  0x2a   :  { %s518_s28 = scalar_lea.vmem %s45_s19, 2048  ;;  %p523_p6 = scmp.lt.s32.totalorder %s45_s19, %s45_s19 }
  0x2b   :  { %p519_p5 = scmp.ne.s32.totalorder %s45_s19, %s518_s28  ;;  %p524_p7 = scmp.lt.s32.totalorder %s518_s28, %s518_s28 }
  0x2d   :  { %p525_p8 = por %p524_p7, %p523_p6 }
  0x2f   :  { %p526_p9 = pnand %p525_p8, %p519_p5 }
  0x31   :  { %529 = shalt.err (!%p526_p9)
}
  0x32   :  { %50 = dma.hbm_to_vmem [thread:$0]  %s674_s3, 2048, %s45_s19, [#allocation6], %s560_s30, %s560_s30, %s561_s6  }
  0x33   :  { %552 = dma.done.wait [#allocation3], 256  }
  0x34   :  { %553 = vsyncadd [#allocation3], 4294967040 }
  0x35   :  { %554 = dma.done.wait [#allocation6], 4096  }
  0x36   :  { %555 = vsyncadd [#allocation6], 4294963200  ;;  %v64_v0 = vld [vmem:[#allocation5] sm:$0xff]  ;;  %v65_v1 = vld [vmem:[#allocation5 + $0x8] sm:$0xff]  ;;  %s563_s9 = smov [#allocation8]  }
  0x37   :  { %v66_v2 = vld [vmem:[#allocation5 + $0x10] sm:$0xff]  ;;  %v394_v3 = vpack.c.bf16 %v65_v1, %v64_v0  ;;  %v67_v4 = vld [vmem:[#allocation5 + $0x18] sm:$0xff]  ;;  %v68_v6 = vld [vmem:[#allocation5 + $0x20] sm:$0xff]  ;;  %s273_s10 = sshll.u32 %s563_s9, 4  ;;  %s274_s10 = int_to_ptr.vmem [resolvable:$true] %s273_s10 }
  0x38   :  { %v398_v5 = vpack.c.bf16 %v67_v4, %v66_v2  ;;  %v69_v7 = vld [vmem:[#allocation5 + $0x28] sm:$0xff]  ;;  %v70_v9 = vld [vmem:[#allocation5 + $0x30] sm:$0xff]  ;;  %v71_v10 = vld [vmem:[#allocation5 + $0x38] sm:$0xff]  ;;  %p535_p11 = scmp.lt.s32.totalorder %s274_s10, %s274_s10 }
  0x39   :  { %395 = vmatprep.subr.bf16.mxu0 %v394_v3  ;;  %v402_v8 = vpack.c.bf16 %v69_v7, %v68_v6  ;;  %v646_v11 = vld [vmem:[#allocation2] sm:$0xff]  ;;  %v164_v12 = vld [vmem:[#allocation7] sm:$0xff]  ;;  %v165_v13 = vld [vmem:[#allocation7 + $0x8] sm:$0xff]  ;;  %v406_v20 = vpack.c.bf16 %v71_v10, %v70_v9 }
  0x3a   :  { %397 = vmatpush3.bf16.msra.mxu0 %v394_v3  ;;  %356 = vmatprep.mubr.f32.mxu0 %v646_v11  ;;  %v166_v14 = vld [vmem:[#allocation7 + $0x10] sm:$0xff]  ;;  %v426_v15 = vpack.c.bf16 %v165_v13, %v164_v12  ;;  %v167_v16 = vld [vmem:[#allocation7 + $0x18] sm:$0xff]  ;;  %v168_v18 = vld [vmem:[#allocation7 + $0x20] sm:$0xff] }
  0x3b   :  { %399 = vmatprep.subr.bf16.mxu0 %v398_v5  ;;  %v430_v17 = vpack.c.bf16 %v167_v16, %v166_v14  ;;  %v169_v19 = vld [vmem:[#allocation7 + $0x28] sm:$0xff]  ;;  %v72_v21 = vld [vmem:[#allocation5 + $0x40] sm:$0xff]  ;;  %v170_v24 = vld [vmem:[#allocation7 + $0x30] sm:$0xff] }
  0x3c   :  { %427 = vmatprep.subr.bf16.mxu1 %v426_v15  ;;  %v73_v22 = vld [vmem:[#allocation5 + $0x48] sm:$0xff]  ;;  %v434_v23 = vpack.c.bf16 %v169_v19, %v168_v18  ;;  %v171_v25 = vld [vmem:[#allocation7 + $0x38] sm:$0xff]  ;;  %v74_v27 = vld [vmem:[#allocation5 + $0x50] sm:$0xff] }
  0x3d   :  { %429 = vmatpush3.bf16.msra.mxu1 %v426_v15  ;;  %v410_v26 = vpack.c.bf16 %v73_v22, %v72_v21  ;;  %v75_v28 = vld [vmem:[#allocation5 + $0x58] sm:$0xff]  ;;  %v438_v29 = vpack.c.bf16 %v171_v25, %v170_v24  ;;  %v172_v30 = vld [vmem:[#allocation7 + $0x40] sm:$0xff]  ;;  %v173_v31 = vld [vmem:[#allocation7 + $0x48] sm:$0xff] }
  0x3e   :  { %401 = vmatpush3.bf16.msra.mxu0 %v398_v5  ;;  %431 = vmatprep.subr.bf16.mxu1 %v430_v17  ;;  %v414_v32 = vpack.c.bf16 %v75_v28, %v74_v27  ;;  %v76_v33 = vld [vmem:[#allocation5 + $0x60] sm:$0xff]  ;;  %v77_v34 = vld [vmem:[#allocation5 + $0x68] sm:$0xff]  ;;  %v442_v35 = vpack.c.bf16 %v173_v31, %v172_v30  ;;  %v174_v36 = vld [vmem:[#allocation7 + $0x50] sm:$0xff] }
  0x3f   :  { %403 = vmatprep.subr.bf16.mxu0 %v402_v8  ;;  %v175_v37 = vld [vmem:[#allocation7 + $0x58] sm:$0xff]  ;;  %v418_v38 = vpack.c.bf16 %v77_v34, %v76_v33  ;;  %v78_v39 = vld [vmem:[#allocation5 + $0x70] sm:$0xff]  ;;  %v176_v42 = vld [vmem:[#allocation7 + $0x60] sm:$0xff] }
  0x40   :  { %v79_v40 = vld [vmem:[#allocation5 + $0x78] sm:$0xff]  ;;  %v446_v41 = vpack.c.bf16 %v175_v37, %v174_v36  ;;  %v177_v43 = vld [vmem:[#allocation7 + $0x68] sm:$0xff]  ;;  %v178_v47 = vld [vmem:[#allocation7 + $0x70] sm:$0xff] }
  0x41   :  { %433 = vmatpush3.bf16.msra.mxu1 %v430_v17  ;;  %v422_v44 = vpack.c.bf16 %v79_v40, %v78_v39  ;;  %v450_v45 = vpack.c.bf16 %v177_v43, %v176_v42  ;;  %v63_v46 = vld [vmem:[#allocation2 + $0x8] sm:$0xff]  ;;  %v286_v50 = vld [vmem:[%s673_s2] ss:$0 sm:$0xff]  ;;  %s530_s2 = scalar_lea.vmem %s274_s10, 256 }
  0x42   :  { %405 = vmatpush3.bf16.msra.mxu0 %v402_v8  ;;  %435 = vmatprep.subr.bf16.mxu1 %v434_v23  ;;  %v179_v48 = vld [vmem:[#allocation7 + $0x78] sm:$0xff]  ;;  %v287_v57 = vld [vmem:[%s675_s4] ss:$0 sm:$0xff]  ;;  %p531_p10 = scmp.ne.s32.totalorder %s274_s10, %s530_s2  ;;  %p536_p12 = scmp.lt.s32.totalorder %s530_s2, %s530_s2 }
  0x43   :  { %407 = vmatprep.subr.bf16.mxu0 %v406_v20  ;;  %v454_v49 = vpack.c.bf16 %v179_v48, %v178_v47 }
  0x44   :  { %p537_p13 = por %p536_p12, %p535_p11 }
  0x45   :  { %437 = vmatpush3.bf16.msra.mxu1 %v434_v23 }
  0x46   :  { %409 = vmatpush3.bf16.msra.mxu0 %v406_v20  ;;  %439 = vmatprep.subr.bf16.mxu1 %v438_v29  ;;  %p538_p0 = pnand %p537_p13, %p531_p10 }
  0x47   :  { %411 = vmatprep.subr.bf16.mxu0 %v410_v26 }
  0x49   :  { %441 = vmatpush3.bf16.msra.mxu1 %v438_v29 }
  0x4a   :  { %413 = vmatpush3.bf16.msra.mxu0 %v410_v26  ;;  %443 = vmatprep.subr.bf16.mxu1 %v442_v35 }
  0x4b   :  { %415 = vmatprep.subr.bf16.mxu0 %v414_v32 }
  0x4d   :  { %445 = vmatpush3.bf16.msra.mxu1 %v442_v35 }
  0x4e   :  { %417 = vmatpush3.bf16.msra.mxu0 %v414_v32  ;;  %447 = vmatprep.subr.bf16.mxu1 %v446_v41 }
  0x4f   :  { %419 = vmatprep.subr.bf16.mxu0 %v418_v38 }
  0x51   :  { %449 = vmatpush3.bf16.msra.mxu1 %v446_v41 }
  0x52   :  { %421 = vmatpush3.bf16.msra.mxu0 %v418_v38  ;;  %451 = vmatprep.subr.bf16.mxu1 %v450_v45 }
  0x53   :  { %423 = vmatprep.subr.bf16.mxu0 %v422_v44 }
  0x55   :  { %453 = vmatpush3.bf16.msra.mxu1 %v450_v45 }
  0x56   :  { %425 = vmatpush3.bf16.msra.mxu0 %v422_v44  ;;  %455 = vmatprep.subr.bf16.mxu1 %v454_v49 }
  0x59   :  { %357 = vmatmul.mubr.f32.vlgmr.msra.gmra.mrb[0].mxu0 %v63_v46  ;;  %457 = vmatpush3.bf16.msra.mxu1 %v454_v49 }
 0x12c   :  { %v358_v51 = vpop.f32.mrb[0].mxu0 }
 0x12d   :  { %v159_v52 = vadd.f32 %v358_v51, %v286_v50  ;;  %v153_v53 = vpop.f32.mrb[1].mxu0 }
 0x12e   :  { %v154_v54 = vadd.f32 %v286_v50, %v153_v53 }
 0x12f   :  { %v163_v56 = vmax.f32 %v159_v52, 0.0 }
 0x130   :  { %v162_v55 = vmax.f32 %v154_v54, 0.0 }
 0x132   :  { %391 = vmatprep.mubr.f32.mxu1 %v162_v55 }
 0x133   :  { %392 = vmatmul.mubr.f32.vlgmr.msra.gmra.mrb[0].mxu1 %v163_v56 }
 0x206   :  { %v393_v58 = vpop.f32.mrb[0].mxu1 }
 0x207   :  { %v259_v59 = vadd.f32 %v393_v58, %v287_v57  ;;  %v253_v60 = vpop.f32.mrb[1].mxu1 }
 0x208   :  { %v254_v61 = vadd.f32 %v287_v57, %v253_v60 }
 0x209   :  { %v263_v62 = vadd.f32 %v259_v59, %v63_v46 }
 0x20a   :  { %v262_v63 = vadd.f32 %v254_v61, %v646_v11 }
 0x20b   :  { %v265_v0 = vmax.f32 %v263_v62, 0.0 }
 0x20c   :  { %v264_v1 = vmax.f32 %v262_v63, 0.0 }
 0x20d   :  { %267 = vst [vmem:[#allocation8 + $0x8] sm:$0xff] %v265_v0 }
 0x20e   :  { %266 = vst [vmem:[#allocation8] sm:$0xff] %v264_v1 }
 0x20f   :  { %541 = shalt.err (!%p538_p0)
}
 0x210   :  { %s542_s12 = scalar_lea.hbm %s676_s5, 256 }
 0x211   :  { %p543_p1 = scmp.ne.s32.totalorder %s676_s5, %s542_s12  ;;  %p546_p2 = scmp.lt.u32.totalorder %s542_s12, %s676_s5 }
 0x213   :  { %p548_p3 = pnand %p546_p2, %p543_p1 }
 0x215   :  { %551 = shalt.err (!%p548_p3)
}
 0x216   :  { %279 = dma.vmem_to_hbm [thread:$0]  %s274_s10, 256, %s676_s5, [#allocation4], %s560_s30, %s560_s30, %s561_s6  }
 0x217   :  { %556 = dma.done.wait [#allocation4], 256  }
 0x218   :  { %557 = vsyncadd [#allocation4], 4294967040 }
 0x219   :  { %283 = vsyncpa [#allocation3], 1 }
 0x21a   :  { %284 = vsyncpa [#allocation6], 1 }
 0x21b   :  { %285 = vsyncpa [#allocation4], 1 }

</bundles_post_ra>
